<compile_context>
chip_gen: v6e
topology: v6e:2x2x1
jax: 0.10.0
libtpu: 0.0.40
codegen_flags: <defaults>
</compile_context>

<pallas_src>
import functools

import jax
import jax.numpy as jnp
from jax import lax
from jax.experimental import pallas as pl
from jax.experimental.pallas import tpu as pltpu


def _round_up(v, m):
    return ((v + m - 1) // m) * m


def _padded_vmem_bytes(rows, cols, dtype):
    """Bytes one (rows, cols) buffer occupies in VMEM after (sublane, 128-lane) tiling."""
    itemsize = jnp.dtype(dtype).itemsize
    sublane = max(8, 32 // itemsize)          # 8 for 32-bit, 16 for bf16, 32 for int8
    return _round_up(max(rows, 1), sublane) * _round_up(max(cols, 1), 128) * itemsize


def _vmem_capacity_bytes():
    try:
        info = pltpu.get_tpu_info()
        cap = getattr(info, "vmem_capacity_bytes", None)
        if cap:
            return int(cap)
    except Exception:
        pass
    return 64 << 20  # conservative fallback (v7x-sized)


def _mlp_graph_predictor_kernel(x_ref, batch_ref, w1_ref, b1_ref, w2_ref, b2_ref,
                                out_ref, pooled_acc, gid_ref, *, n_total, tile_n):
    # x_ref:      (F, TN)  feature-major node tile (lane-dense)
    # batch_ref:  (1, TN)  int32 graph id per node (tile)
    # w1_ref:     (F, H)   fc_global weight (stored [in, out]), b1_ref: (1, H)
    # w2_ref:     (H, T)   out weight (stored [in, out]),       b2_ref: (1, T)
    # out_ref:    (G, T)   same block every step (resident output)
    # pooled_acc: (G, F)   f32 VMEM accumulator
    # gid_ref:    (G, TN)  int32 VMEM scratch holding the constant graph-id iota
    n = pl.program_id(0)

    @pl.when(n == 0)
    def _init():
        pooled_acc[...] = jnp.zeros_like(pooled_acc)
        gid_ref[...] = lax.broadcasted_iota(jnp.int32, gid_ref.shape, 0)

    # Zero out-of-range (padded tail) columns of x so stale VMEM contents (even
    # NaN/Inf) can never reach the accumulator.  One iota, one scalar compare.
    valid = lax.broadcasted_iota(jnp.int32, (1, tile_n), 1) < (n_total - n * tile_n)
    xv = jnp.where(valid, x_ref[...], 0)                          # (F, TN)

    # One-hot graph assignment for this tile.  Padded-tail columns are harmless
    # because xv is exactly zero there.
    assign = (gid_ref[...] == batch_ref[...]).astype(xv.dtype)    # (G, TN)

    # global_add_pool contribution: contract both operands over the node (lane)
    # axis (q @ k^T MXU pattern), accumulate in f32.
    pooled_acc[...] += lax.dot_general(
        assign, xv, dimension_numbers=(((1,), (1,)), ((), ())),
        preferred_element_type=jnp.float32)

    # MLP + writeback only once, on the final reduction step.
    @pl.when(n == pl.num_programs(0) - 1)
    def _epilogue():
        pooled = pooled_acc[...]                                  # (G, F) f32
        w1 = w1_ref[...]
        h = jnp.dot(pooled.astype(w1.dtype), w1,
                    preferred_element_type=jnp.float32) + b1_ref[...].astype(jnp.float32)
        h = jnp.maximum(h, 0.0)
        w2 = w2_ref[...]
        y = jnp.dot(h.astype(w2.dtype), w2,
                    preferred_element_type=jnp.float32) + b2_ref[...].astype(jnp.float32)
        out_ref[...] = y.astype(out_ref.dtype)


def mlp_graph_predictor(x, batch, num_graphs, w1, b1, w2, b2, *, tile_n=None):
    """x: [N, F] node features, batch: [N] int32 graph ids in [0, num_graphs).

    Computes out(relu(fc_global(global_add_pool(x, batch)))) -> [num_graphs, T].
    Nodes whose graph id falls outside [0, num_graphs) are dropped (segment_sum
    semantics).
    """
    N, F = x.shape
    H = w1.shape[1]
    T = w2.shape[1]
    G = int(num_graphs)
    itemsize = jnp.dtype(x.dtype).itemsize

    # ---- node tile size -------------------------------------------------------
    # Each grid step pays a fixed ~0.35us pipeline overhead, so target >= ~1 MiB of
    # streamed x per step (for small F this means thousands of rows), capped at 8192
    # rows, bounded by N, and rounded to a lane multiple of 128.
    if tile_n is None:
        tile_n = (1 << 20) // max(1, F * itemsize)
        tile_n = max(2048, min(tile_n, 8192))
    tile_n = int(min(tile_n, _round_up(N, 128)))
    tile_n = max(128, _round_up(tile_n, 128))

    # ---- (8,128)-padding-aware VMEM accounting --------------------------------
    def est_vmem(tn):
        return (2 * _padded_vmem_bytes(F, tn, x.dtype)        # x tiles (double buffered)
                + 2 * _padded_vmem_bytes(1, tn, jnp.int32)    # batch-id tiles
                + 2 * _padded_vmem_bytes(F, H, w1.dtype)      # resident weights
                + 2 * _padded_vmem_bytes(1, H, b1.dtype)
                + 2 * _padded_vmem_bytes(H, T, w2.dtype)
                + 2 * _padded_vmem_bytes(1, T, b2.dtype)
                + 2 * _padded_vmem_bytes(G, T, x.dtype)       # output block
                + _padded_vmem_bytes(G, F, jnp.float32)       # pooled accumulator
                + _padded_vmem_bytes(G, tn, jnp.int32))       # hoisted graph-id iota

    # ---- generation-aware VMEM budget (~48 MiB on v7x, ~96 MiB on v5e/v6e) ----
    budget = int(_vmem_capacity_bytes() * 0.75)
    while tile_n > 128 and est_vmem(tile_n) + (4 << 20) > budget:
        tile_n = max(128, _round_up(tile_n // 2, 128))
    grid_n = pl.cdiv(N, tile_n)
    vmem_limit = int(min(budget, max(32 << 20, est_vmem(tile_n) + (8 << 20))))

    # Feature-major stream: (F, tile_n) blocks are lane-dense, so one tile costs
    # F*tile_n*itemsize of VMEM instead of tile_n*128*itemsize (16x less at F=8).
    # (In a real pipeline x would be produced feature-major upstream; this transpose
    # is layout plumbing for the demo interface.)
    x_t = x.T
    batch2d = batch.astype(jnp.int32).reshape(1, N)
    b1_2d = b1.reshape(1, H)
    b2_2d = b2.reshape(1, T)

    flops = 2 * N * F * G + 2 * G * F * H + 2 * G * H * T
    bytes_accessed = (N * F * itemsize + N * 4
                      + F * H * jnp.dtype(w1.dtype).itemsize
                      + H * T * jnp.dtype(w2.dtype).itemsize
                      + (H + T) * 4 + G * T * itemsize)
    cost = pl.CostEstimate(flops=flops, transcendentals=0, bytes_accessed=bytes_accessed)

    kernel = functools.partial(_mlp_graph_predictor_kernel, n_total=N, tile_n=tile_n)

    # TODO(synk): on v7x, split the node axis across the two TensorCores (leading
    # "parallel" grid axis + per-core partial pooled outputs, combined outside) for
    # ~2x on very large N; single-core loop is kept here for portability.
    return pl.pallas_call(
        kernel,
        out_shape=jax.ShapeDtypeStruct((G, T), x.dtype),
        grid=(grid_n,),
        in_specs=[
            pl.BlockSpec((F, tile_n), lambda n: (0, n)),   # stream x feature-major
            pl.BlockSpec((1, tile_n), lambda n: (0, n)),   # stream batch ids
            pl.BlockSpec((F, H), lambda n: (0, 0)),        # weights stay resident
            pl.BlockSpec((1, H), lambda n: (0, 0)),
            pl.BlockSpec((H, T), lambda n: (0, 0)),
            pl.BlockSpec((1, T), lambda n: (0, 0)),
        ],
        out_specs=pl.BlockSpec((G, T), lambda n: (0, 0)),
        scratch_shapes=[pltpu.VMEM((G, F), jnp.float32),
                        pltpu.VMEM((G, tile_n), jnp.int32)],
        compiler_params=pltpu.CompilerParams(
            dimension_semantics=("arbitrary",),            # node axis is a reduction
            vmem_limit_bytes=vmem_limit),
        cost_estimate=cost,
    )(x_t, batch2d, w1, b1_2d, w2, b2_2d)


def _reference(x, batch, num_graphs, w1, b1, w2, b2):
    pooled = jax.ops.segment_sum(x.astype(jnp.float32), batch, num_segments=num_graphs)
    h = jnp.maximum(pooled @ w1.astype(jnp.float32) + b1.astype(jnp.float32), 0.0)
    return h @ w2.astype(jnp.float32) + b2.astype(jnp.float32)


if __name__ == "__main__":
    # Shapes implied by the module: dim_node_features=8, hidden_units=32, dim_target=4;
    # 4 graphs, N=1000 nodes.  tile_n=384 forces grid=3 so the multi-tile accumulation
    # and the padded-tail masking path are both exercised.
    N, F, G, H, T = 1000, 8, 4, 32, 4

    key = jax.random.PRNGKey(0)
    kx, kw1, kb1, kw2, kb2 = jax.random.split(key, 5)

    x = jax.random.normal(kx, (N, F), dtype=jnp.float32)
    # Uneven graph sizes: 300 / 250 / 250 / 200 nodes (sorted, PyG-style batch vector).
    sizes = [300, 250, 250, 200]
    batch = jnp.concatenate(
        [jnp.full((s,), g, jnp.int32) for g, s in enumerate(sizes)])

    # Deterministic parameter init (Linear-like fan-in scaling), stored as [in, out].
    w1 = jax.random.uniform(kw1, (F, H), jnp.float32, -1.0, 1.0) / jnp.sqrt(F)
    b1 = jax.random.uniform(kb1, (H,), jnp.float32, -1.0, 1.0) / jnp.sqrt(F)
    w2 = jax.random.uniform(kw2, (H, T), jnp.float32, -1.0, 1.0) / jnp.sqrt(H)
    b2 = jax.random.uniform(kb2, (T,), jnp.float32, -1.0, 1.0) / jnp.sqrt(H)

    out = mlp_graph_predictor(x, batch, G, w1, b1, w2, b2, tile_n=384)
    out = jax.block_until_ready(out)

    ref = _reference(x, batch, G, w1, b1, w2, b2)
    assert out.shape == (G, T)
    rel_err = float(jnp.linalg.norm(out.astype(jnp.float32) - ref)
                    / (jnp.linalg.norm(ref) + 1e-12))
    assert rel_err < 1e-2, f"mismatch vs reference (rel_err={rel_err})"

    print("KERNEL_OK")
</pallas_src>

<mosaic_0001>
module attributes {stable_mosaic.version = 11 : i64} {
  func.func @_mlp_graph_predictor_kernel(%arg0: i32, %arg1: memref<8x384xf32, #tpu.memory_space<vmem>>, %arg2: memref<1x384xi32, #tpu.memory_space<vmem>>, %arg3: memref<8x32xf32, #tpu.memory_space<vmem>>, %arg4: memref<1x32xf32, #tpu.memory_space<vmem>>, %arg5: memref<32x4xf32, #tpu.memory_space<vmem>>, %arg6: memref<1x4xf32, #tpu.memory_space<vmem>>, %arg7: memref<4x4xf32, #tpu.memory_space<vmem>>, %arg8: memref<4x8xf32, #tpu.memory_space<vmem>>, %arg9: memref<4x384xi32, #tpu.memory_space<vmem>>) attributes {dimension_semantics = [#tpu.dimension_semantics<arbitrary>], iteration_bounds = array<i64: 3>, scalar_prefetch = 0 : i64, scratch_operands = 2 : i64, tpu.core_type = #tpu.core_type<tc>, window_params = [{transform_indices = @transform_0, window_bounds = array<i64: 8, 384>}, {transform_indices = @transform_1, window_bounds = array<i64: 1, 384>}, {pipeline_mode = #tpu.pipeline_mode<synchronous>, transform_indices = @transform_2, window_bounds = array<i64: 8, 32>}, {pipeline_mode = #tpu.pipeline_mode<synchronous>, transform_indices = @transform_3, window_bounds = array<i64: 1, 32>}, {pipeline_mode = #tpu.pipeline_mode<synchronous>, transform_indices = @transform_4, window_bounds = array<i64: 32, 4>}, {pipeline_mode = #tpu.pipeline_mode<synchronous>, transform_indices = @transform_5, window_bounds = array<i64: 1, 4>}, {pipeline_mode = #tpu.pipeline_mode<synchronous>, transform_indices = @transform_6, window_bounds = array<i64: 4, 4>}]} {
    %c0_i32 = arith.constant 0 : i32
    %0 = arith.cmpi eq, %arg0, %c0_i32 : i32
    %1 = arith.extui %0 : i1 to i32
    %c0_i32_0 = arith.constant 0 : i32
    %2 = arith.cmpi ne, %1, %c0_i32_0 : i32
    scf.if %2 {
      %cst_12 = arith.constant 0.000000e+00 : f32
      %27 = vector.broadcast %cst_12 : f32 to vector<4x8xf32>
      %c0_13 = arith.constant 0 : index
      %c0_14 = arith.constant 0 : index
      %28 = vector.load %arg8[%c0_13, %c0_14] : memref<4x8xf32, #tpu.memory_space<vmem>>, vector<4x8xf32>
      tpu.vector_store %arg8[%c0_13, %c0_14], %27 {strides = array<i32>} : memref<4x8xf32, #tpu.memory_space<vmem>>, vector<4x8xf32>,
      %29 = tpu.iota {dimensions = array<i32: 0>} : vector<4x384xi32>
      %c0_15 = arith.constant 0 : index
      %c0_16 = arith.constant 0 : index
      %30 = vector.load %arg9[%c0_15, %c0_16] : memref<4x384xi32, #tpu.memory_space<vmem>>, vector<4x384xi32>
      tpu.vector_store %arg9[%c0_15, %c0_16], %29 {strides = array<i32>} : memref<4x384xi32, #tpu.memory_space<vmem>>, vector<4x384xi32>,
    } else {
    }
    %3 = tpu.iota {dimensions = array<i32: 1>} : vector<1x384xi32>
    %c384_i32 = arith.constant 384 : i32
    %4 = arith.muli %arg0, %c384_i32 : i32
    %c1000_i32 = arith.constant 1000 : i32
    %5 = arith.subi %c1000_i32, %4 : i32
    %6 = vector.broadcast %5 : i32 to vector<1x384xi32>
    %7 = arith.cmpi slt, %3, %6 : vector<1x384xi32>
    %c0 = arith.constant 0 : index
    %c0_1 = arith.constant 0 : index
    %8 = vector.load %arg1[%c0, %c0_1] : memref<8x384xf32, #tpu.memory_space<vmem>>, vector<8x384xf32>
    %c0_i32_2 = arith.constant 0 : i32
    %9 = arith.sitofp %c0_i32_2 : i32 to f32
    %10 = vector.shape_cast %7 : vector<1x384xi1> to vector<1x384xi1>
    %11 = vector.broadcast %10 : vector<1x384xi1> to vector<8x384xi1>
    %12 = vector.broadcast %9 : f32 to vector<8x384xf32>
    %13 = arith.select %11, %8, %12 : vector<8x384xi1>, vector<8x384xf32>
    %c0_3 = arith.constant 0 : index
    %c0_4 = arith.constant 0 : index
    %14 = vector.load %arg9[%c0_3, %c0_4] : memref<4x384xi32, #tpu.memory_space<vmem>>, vector<4x384xi32>
    %c0_5 = arith.constant 0 : index
    %c0_6 = arith.constant 0 : index
    %15 = vector.load %arg2[%c0_5, %c0_6] : memref<1x384xi32, #tpu.memory_space<vmem>>, vector<1x384xi32>
    %16 = vector.broadcast %15 : vector<1x384xi32> to vector<4x384xi32>
    %17 = arith.cmpi eq, %14, %16 : vector<4x384xi32>
    %18 = arith.extui %17 : vector<4x384xi1> to vector<4x384xi32>
    %19 = arith.sitofp %18 : vector<4x384xi32> to vector<4x384xf32>
    %c0_7 = arith.constant 0 : index
    %c0_8 = arith.constant 0 : index
    %20 = vector.load %arg8[%c0_7, %c0_8] : memref<4x8xf32, #tpu.memory_space<vmem>>, vector<4x8xf32>
    %cst = arith.constant dense<0.000000e+00> : vector<4x8xf32>
    %21 = tpu.matmul %19, %13, %cst {dimension_numbers = #tpu.dot_dimension_numbers<[1], [1], [0], [0], [0, 0, 1, 0], [], []>} : vector<4x384xf32>, vector<8x384xf32>, vector<4x8xf32> -> vector<4x8xf32>
    %22 = arith.addf %20, %21 : vector<4x8xf32>
    %c0_9 = arith.constant 0 : index
    %c0_10 = arith.constant 0 : index
    %23 = vector.load %arg8[%c0_9, %c0_10] : memref<4x8xf32, #tpu.memory_space<vmem>>, vector<4x8xf32>
    tpu.vector_store %arg8[%c0_9, %c0_10], %22 {strides = array<i32>} : memref<4x8xf32, #tpu.memory_space<vmem>>, vector<4x8xf32>,
    %c2_i32 = arith.constant 2 : i32
    %24 = arith.cmpi eq, %arg0, %c2_i32 : i32
    %25 = arith.extui %24 : i1 to i32
    %c0_i32_11 = arith.constant 0 : i32
    %26 = arith.cmpi ne, %25, %c0_i32_11 : i32
    scf.if %26 {
      %c0_12 = arith.constant 0 : index
      %c0_13 = arith.constant 0 : index
      %27 = vector.load %arg8[%c0_12, %c0_13] : memref<4x8xf32, #tpu.memory_space<vmem>>, vector<4x8xf32>
      %c0_14 = arith.constant 0 : index
      %c0_15 = arith.constant 0 : index
      %28 = vector.load %arg3[%c0_14, %c0_15] : memref<8x32xf32, #tpu.memory_space<vmem>>, vector<8x32xf32>
      %cst_16 = arith.constant dense<0.000000e+00> : vector<4x32xf32>
      %29 = tpu.matmul %27, %28, %cst_16 {dimension_numbers = #tpu.dot_dimension_numbers<[1], [0], [0], [1], [0, 0, 1, 1], [], []>} : vector<4x8xf32>, vector<8x32xf32>, vector<4x32xf32> -> vector<4x32xf32>
      %c0_17 = arith.constant 0 : index
      %c0_18 = arith.constant 0 : index
      %30 = vector.load %arg4[%c0_17, %c0_18] : memref<1x32xf32, #tpu.memory_space<vmem>>, vector<1x32xf32>
      %31 = vector.broadcast %30 : vector<1x32xf32> to vector<4x32xf32>
      %32 = arith.addf %29, %31 : vector<4x32xf32>
      %cst_19 = arith.constant 0.000000e+00 : f32
      %33 = vector.broadcast %cst_19 : f32 to vector<4x32xf32>
      %34 = arith.maximumf %32, %33 : vector<4x32xf32>
      %c0_20 = arith.constant 0 : index
      %c0_21 = arith.constant 0 : index
      %35 = vector.load %arg5[%c0_20, %c0_21] : memref<32x4xf32, #tpu.memory_space<vmem>>, vector<32x4xf32>
      %cst_22 = arith.constant dense<0.000000e+00> : vector<4x4xf32>
      %36 = tpu.matmul %34, %35, %cst_22 {dimension_numbers = #tpu.dot_dimension_numbers<[1], [0], [0], [1], [0, 0, 1, 1], [], []>} : vector<4x32xf32>, vector<32x4xf32>, vector<4x4xf32> -> vector<4x4xf32>
      %c0_23 = arith.constant 0 : index
      %c0_24 = arith.constant 0 : index
      %37 = vector.load %arg6[%c0_23, %c0_24] : memref<1x4xf32, #tpu.memory_space<vmem>>, vector<1x4xf32>
      %38 = vector.broadcast %37 : vector<1x4xf32> to vector<4x4xf32>
      %39 = arith.addf %36, %38 : vector<4x4xf32>
      %c0_25 = arith.constant 0 : index
      %c0_26 = arith.constant 0 : index
      %40 = vector.load %arg7[%c0_25, %c0_26] : memref<4x4xf32, #tpu.memory_space<vmem>>, vector<4x4xf32>
      tpu.vector_store %arg7[%c0_25, %c0_26], %39 {strides = array<i32>} : memref<4x4xf32, #tpu.memory_space<vmem>>, vector<4x4xf32>,
    } else {
    }
    return
  }
  func.func @transform_0(%arg0: i32) -> (i32, i32) {
    %c0_i32 = arith.constant 0 : i32
    %c0_i32_0 = arith.constant 0 : i32
    return %c0_i32, %arg0 : i32, i32
  }
  func.func @transform_1(%arg0: i32) -> (i32, i32) {
    %c0_i32 = arith.constant 0 : i32
    %c0_i32_0 = arith.constant 0 : i32
    return %c0_i32, %arg0 : i32, i32
  }
  func.func @transform_2(%arg0: i32) -> (i32, i32) {
    %c0_i32 = arith.constant 0 : i32
    %c0_i32_0 = arith.constant 0 : i32
    %c0_i32_1 = arith.constant 0 : i32
    return %c0_i32, %c0_i32_0 : i32, i32
  }
  func.func @transform_3(%arg0: i32) -> (i32, i32) {
    %c0_i32 = arith.constant 0 : i32
    %c0_i32_0 = arith.constant 0 : i32
    %c0_i32_1 = arith.constant 0 : i32
    return %c0_i32, %c0_i32_0 : i32, i32
  }
  func.func @transform_4(%arg0: i32) -> (i32, i32) {
    %c0_i32 = arith.constant 0 : i32
    %c0_i32_0 = arith.constant 0 : i32
    %c0_i32_1 = arith.constant 0 : i32
    return %c0_i32, %c0_i32_0 : i32, i32
  }
  func.func @transform_5(%arg0: i32) -> (i32, i32) {
    %c0_i32 = arith.constant 0 : i32
    %c0_i32_0 = arith.constant 0 : i32
    %c0_i32_1 = arith.constant 0 : i32
    return %c0_i32, %c0_i32_0 : i32, i32
  }
  func.func @transform_6(%arg0: i32) -> (i32, i32) {
    %c0_i32 = arith.constant 0 : i32
    %c0_i32_0 = arith.constant 0 : i32
    %c0_i32_1 = arith.constant 0 : i32
    return %c0_i32, %c0_i32_0 : i32, i32
  }
}

</mosaic_0001>

<bundles_post_ra>
// kernel: tpu_custom_call.1
= control target key start
LH: loop header
LB: loop body
LE: loop exit
PB: predicated region body
PF: predicated region fallthrough
CT: control target
= control target key end

     0   :  { %11 = vsyncpa [#allocation5], 0  ;;  %s1137_s0 = inlined_call_operand.hbm [shape: f32[8,1000], index: 0, kind: input, shape index: {}]   ;;  %s1138_s1 = inlined_call_operand.vmem [shape: s32[1,1000], index: 1, kind: input, shape index: {}]   ;;  %s1139_s2 = inlined_call_operand.vmem [shape: f32[8,32], index: 2, kind: input, shape index: {}]   ;;  %s1140_s3 = inlined_call_operand.vmem [shape: f32[1,32], index: 3, kind: input, shape index: {}]   ;;  %s1141_s4 = inlined_call_operand.vmem [shape: f32[32,4], index: 4, kind: input, shape index: {}]   ;;  %s1142_s5 = inlined_call_operand.vmem [shape: f32[1,4], index: 5, kind: input, shape index: {}]   ;;  %s1143_s6 = inlined_call_operand.hbm [shape: f32[4,4], index: 6, kind: output, shape index: {}]  }
   0x1   :  { %13 = vsyncpa [#allocation5 + $0x1], 0 }
   0x2   :  { %14 = vsyncpa [#allocation6], 0  ;;  %s995_s21 = smov 0   ;;  %s997_s22 = smov 0  }
   0x3   :  { %s999_s23 = smov 0   ;;  %s1001_s24 = smov 0  }
   0x4 LB: > { %s1014_s25 = sadd.s32 4294967295, %s949_s24   ;;  %s1017_s26 = sadd.s32 1, %s949_s24   ;;  %s949_s24 = sphi %s1001_s24, %s1148_s24   ;;  %s945_s23 = sphi %s999_s23, %s1147_s23   ;;  %s941_s22 = sphi %s997_s22, %s1146_s22   ;;  %s937_s21 = sphi %s995_s21, %s1145_s21  }
   0x5   : > { %s24_s27 = ssub.s32 %s949_s24, %s1017_s26  ;;  %s27_s28 = sadd.s32 1, %s945_s23 }
   0x6   : > { %p25_p0 = scmp.eq.s32.totalorder %s24_s27, 0  ;;  %p34_p1 = scmp.ne.s32.totalorder %s945_s23, %s941_s22 }
   0x7   : > { %p35_p2 = scmp.eq.s32.totalorder %s949_s24, 0  ;;  %p40_p3 = scmp.ne.s32.totalorder %s941_s22, %s937_s21 }
   0x8   : > { %s1027_s29 = scalar_select %p25_p0, %s945_s23, %s27_s28  }
   0x9   : > { %p36_p4 = por %p35_p2, %p34_p1  ;;  %p41_p5 = scmp.eq.s32.totalorder %s1014_s25, 0 }
   0xa   : > { %p757_p7 = scmp.ge.s32.totalorder %s949_s24, 3 }
   0xb   : > { %p1030_p6 = por %p41_p5, %p40_p3 }
   0xc   : > { %203 = sbr.rel (%p757_p7) target bundleno = 50 (0x32), region = 32 }
  0x11   : > { %206 = sbr.rel (!%p36_p4) target bundleno = 50 (0x32), region = 36  ;;  %s207_s7 = sand.u32 (%p36_p4), 1, %s945_s23  }
  0x12   : > { %s212_s8 = smul.u32 (%p36_p4), 3, %s949_s24  ;;  %s1040_s13 = scalar_lea.sflag (%p36_p4), [#allocation5], %s207_s7 }
  0x13   : > { %s812_s9 = smul.u32 (%p36_p4), 24, %s207_s7 }
  0x14   : > { %s213_s10 = ssub.s32 (%p36_p4), 8, %s212_s8 }
  0x15   : > { %p214_p8 = scmp.lt.s32.totalorder (%p36_p4), %s213_s10, 3  ;;  %s211_s14 = scalar_lea.vmem (%p36_p4), [#allocation4], %s812_s9 }
  0x17   : > { %s1150_s10 = smov (!%p214_p8, %s213_s10), 3 }
  0x18   : > { %s1037_s11 = sshll.u32 %s1150_s10, 7 }
  0x19   : > { %s218_s12 = ssub.s32 384, %s1037_s11 }
  0x1a   : > { %219 = vsyncadd %s1040_s13, %s218_s12  ;;  %p759_p9 = scmp.ne.s32.totalorder %s1037_s11, 0  ;;  %s781_s15 = smul.u32 384, %s949_s24 }
  0x1b   : > { %s225_s16 = sshll.u32 %s211_s14, 4  ;;  %s865_s28 = scalar_lea.hbm %s1137_s0, 1024  ;;  %s226_s16 = int_to_ptr.vmem [resolvable:$true] %s225_s16 }
  0x1c   : > { %s222_s19 = scalar_lea.hbm %s1137_s0, %s781_s15 }
  0x1d   : > { %s861_s20 = scalar_lea.hbm %s222_s19, %s1037_s11  ;;  %p866_p13 = scmp.lt.s32.totalorder %s222_s19, %s1137_s0 }
  0x1e   : > { %p862_p10 = scmp.ne.s32.totalorder %s222_s19, %s861_s20  ;;  %p867_p0 = scmp.lt.s32.totalorder %s865_s28, %s861_s20 }
  0x20   : > { %p863_p11 = pnand %p862_p10, %p759_p9  ;;  %p868_p1 = por %p867_p0, %p866_p13 }
  0x22   : > { %p864_p12 = pneg %p863_p11 }
  0x24   : > { %p869_p2 = pnand %p868_p1, %p864_p12 }
  0x26   : > { %872 = shalt.err (!%p869_p2)
}
  0x27   : > { %s873_s9 = scalar_lea.vmem %s226_s16, %s1037_s11  ;;  %s951_s10 = smov [#allocation4]  }
  0x28   : > { %p874_p3 = scmp.ne.s32.totalorder %s226_s16, %s873_s9  ;;  %s877_s12 = sshll.u32 %s951_s10, 4  ;;  %s878_s12 = int_to_ptr.vmem [resolvable:$false] %s877_s12 }
  0x29   : > { %s879_s14 = scalar_lea.vmem %s878_s12, 768  ;;  %p880_p7 = scmp.lt.s32.totalorder %s226_s16, %s878_s12 }
  0x2a   : > { %p875_p4 = pnand %p874_p3, %p759_p9  ;;  %p881_p8 = scmp.lt.s32.totalorder %s879_s14, %s873_s9 }
  0x2c   : > { %p876_p5 = pneg %p875_p4  ;;  %p882_p10 = por %p881_p8, %p880_p7 }
  0x2e   : > { %p883_p11 = pnand %p882_p10, %p876_p5 }
  0x30   : > { %886 = shalt.err (!%p883_p11)
}
  0x31   : > { %228 = dma.hbm_to_vmem [thread:$0]  (%p759_p9), %s222_s19, %s1037_s11, %s226_s16, %s1040_s13  }
  0x32 PF: > { %p763_p12 = scmp.ge.s32.totalorder %s949_s24, 1  ;;  %p246_p13 = scmp.lt.s32.totalorder %s949_s24, 4 }
  0x34   : > { %p247_p0 = pnand %p763_p12, %p246_p13 }
  0x35   : > { %s252_s15 = sand.u32 (!%p247_p0), 1, %s941_s22  }
  0x36   : > { %250 = sbr.rel (%p247_p0) target bundleno = 706 (0x2c2), region = 44  ;;  %s253_s18 = scalar_lea.sflag (!%p247_p0), [#allocation5], %s252_s15 }
  0x37   : > { %s813_s17 = smul.u32 (!%p247_p0), 24, %s252_s15 }
  0x39   : > { %s1067_s20 = scalar_lea.vmem (!%p247_p0), [#allocation4], %s813_s17 }
  0x3b   : > { %928 = dma.done.wait (%p1030_p6), %s253_s18, 384  }
  0x3c   : > { %930 = vsyncadd (%p1030_p6), %s253_s18, 4294966912  ;;  %s293_s11 = smul.u32 3, %s1014_s25  ;;  %p764_p1 = scmp.ne.s32.totalorder %s1014_s25, 0 }
  0x3e   : > { %p298_p9 = scmp.lt.s32.totalorder %s293_s11, 7  ;;  %309 = sbr.rel (%p764_p1) target bundleno = 77 (0x4d), region = 52 }
  0x40   : > { %s1152_s11 = smov (!%p298_p9, %s293_s11), 7 }
  0x41   : > { %s300_s16 = scalar_lea.vmem %s1138_s1, %s1152_s11 }
  0x43   : > { %vm310_vm0 = vcmask 60416   ;;  %v312_v0 = vlaneseq  ;;  %v952_v1 = vmov 0.0   ;;  %v953_v2 = vmov 839922192  }
  0x44   : > { %311 = vst.msk [vmem:[#allocation2] sm:$0xf] %vm310_vm0, %v952_v1  ;;  %v315_v3 = vunpack.c.l.s4 %v953_v2 }
  0x45   : > { %v313_v4 = vshrl.u32 %v312_v0, 7 }
  0x46   : > { %v316_v5 = vunpack.c.0.s8 %v315_v3 }
  0x48   : > { %v319_v6 = vsub.s32 %v316_v5, %v313_v4 }
  0x4a   : > { %v320_v7 = vrot.slane %v313_v4, %v319_v6 }
  0x4c   : > { %321 = vst [vmem:[#allocation3] sm:$0xff] %v320_v7  ;;  %322 = vst [vmem:[#allocation3 + $0x8] sm:$0xf] %v320_v7 }
  0x4d PF: > { %v323_v8 = vlaneseq  ;;  %s327_s30 = smul.u32 384, %s1014_s25  ;;  %v954_v9 = vmov 0.0   ;;  %vm955_vm1 = vmmov 0   ;;  %v335_v13 = vld [vmem:[%s1067_s20 + $0x10] sm:$0xff]  ;;  %v334_v16 = vld [vmem:[%s1067_s20 + $0x8] sm:$0xff]  ;;  %v333_v19 = vld [vmem:[%s1067_s20] sm:$0xff] }
  0x4e   : > { %791 = vmatprep.subr.mxu1 %v954_v9  ;;  %793 = vmatprep.mubr.msk.f32.mxu1 %vm955_vm1, %v954_v9  ;;  %v347_v17 = vld [vmem:[%s300_s16] sm:$0x7]  ;;  %v956_v28 = vmov 1.0   ;;  %vm512_vm7 = vcmask 60416   ;;  %p772_p6 = scmp.ne.s32.totalorder %s1014_s25, 2 }
  0x4f   : > { %v324_v10 = vand.u32 127, %v323_v8  ;;  %s328_s19 = ssub.s32 1000, %s327_s30  ;;  %v349_v11 = vshrl.u32 %v323_v8, 7  ;;  %v367_v33 = vld [vmem:[#allocation2] sm:$0xf] }
  0x50   : > { %v329_v12 = vstv %s328_s19 }
  0x51   : > { %v326_v14 = vadd.s32 256, %v324_v10  ;;  %v325_v15 = vadd.s32 128, %v324_v10  ;;  %v358_v18 = vsub.s32 2, %v349_v11  ;;  %vm330_vm2 = vcmp.lt.s32.totalorder %v324_v10, %v329_v12 }
  0x52   : > { %v350_v21 = vsub.s32 0, %v349_v11  ;;  %v354_v22 = vsub.s32 1, %v349_v11 }
  0x53   : > { %v346_v20 = vld [vmem:[#allocation3 + $0x8] sm:$0xf]  ;;  %vm332_vm3 = vcmp.lt.s32.totalorder %v326_v14, %v329_v12  ;;  %vm331_vm4 = vcmp.lt.s32.totalorder %v325_v15, %v329_v12  ;;  %v359_v23 = vrot.slane %v347_v17, %v358_v18  ;;  %v345_v26 = vld [vmem:[#allocation3] sm:$0xff] }
  0x54   : > { %792 = vmatpush3.xpose.msk.msra.mxu1 %vm332_vm3, %v335_v13  ;;  %767 = vmatprep.subr.msk.mxu0 %vm331_vm4, %v334_v16  ;;  %v351_v24 = vrot.slane %v347_v17, %v350_v21  ;;  %v355_v25 = vrot.slane %v347_v17, %v354_v22 }
  0x55   : > { %768 = vmatpush1.xpose.msk.msra.mxu0 %vm330_vm2, %v333_v19  ;;  %vm362_vm5 = vcmp.eq.s32.totalorder %v346_v20, %v359_v23 }
  0x56   : > { %v360_v27 = vcombine.low %v351_v24, %v355_v25 }
  0x57   : > { %794 = vmatmul.mubr.msk.f32.vlgmr.msra.gmra.mxu1 %vm362_vm5, %v956_v28 }
  0x58   : > { %vm361_vm6 = vcmp.eq.s32.totalorder %v345_v26, %v360_v27 }
  0x59   : > { %v765_v29 = vsel %vm361_vm6, 1.0, %v954_v9 }
  0x5a   : > { %v369_v30 = vcombine.high %v765_v29, %v765_v29 }
  0x5c   : > { %435 = vmatprep.mubr.f32.mxu0 %v369_v30 }
  0x5d   : > { %769 = vmatmul.mubr.msk.f32.vlgmr.msra.gmra.mxu0 %vm361_vm6, %v956_v28 }
 0x117   : > { %v507_v31 = vpop.f32.mrf.mxu1 }
 0x119   : > { %v795_v32 = vpop.f32.mrf.mxu1 }
 0x11d   : > { %v437_v34 = vpop.f32.mrf.mxu0 }
 0x11e   : > { %v508_v35 = vadd.f32 %v507_v31, %v437_v34  ;;  %517 = sbr.rel (%p772_p6) target bundleno = 691 (0x2b3), region = 56 }
 0x11f   : > { %v439_v36 = vpop.f32.mrf.mxu0 }
 0x120   : > { %v511_v37 = vadd.f32 %v508_v35, %v367_v33 }
 0x122   : > { %513 = vst.msk [vmem:[#allocation2] sm:$0xf] %vm512_vm7, %v511_v37 }
 0x123   : > { %v519_v38 = vld [vmem:[%s1139_s2] sm:$0xff]  ;;  %vm527_vm8 = vcmask 64512   ;;  %v957_v40 = vmov 0.0   ;;  %vm958_vm9 = vmmov 0   ;;  %v605_v41 = vld [vmem:[%s1141_s4 + $0x18] sm:$0xff]  ;;  %v604_v42 = vld [vmem:[%s1141_s4 + $0x10] sm:$0xff] }
 0x124   : > { %796 = vmatprep.subr.mxu0 %v957_v40  ;;  %798 = vmatprep.mubr.msk.f32.mxu0 %vm958_vm9, %v957_v40  ;;  %v603_v43 = vld [vmem:[%s1141_s4 + $0x8] sm:$0xff]  ;;  %v602_v44 = vld [vmem:[%s1141_s4] sm:$0xff]  ;;  %vm613_vm10 = vcmask 261120   ;;  %vm687_vm11 = vcmask 27648  }
 0x125   : > { %797 = vmatpush3.msra.mxu0 %v519_v38  ;;  %801 = vmatprep.subr.mxu1 %v957_v40  ;;  %v773_v45 = vld [vmem:[%s1140_s3] ss:$0 sm:$0xff] }
 0x126   : > { %802 = vmatpush3.msra.mxu1 %v605_v41  ;;  %809 = vmatprep.mubr.msk.f32.mxu1 %vm958_vm9, %v957_v40  ;;  %v775_v50 = vld [vmem:[%s1142_s5] ss:$0 sm:$0xff] }
 0x127   : > { %803 = vmatprep.subr.mxu1 %v957_v40 }
 0x128   : > { %804 = vmatpush3.msra.mxu1 %v604_v42 }
 0x129   : > { %v518_v39 = vld [vmem:[#allocation2] sm:$0xf]  ;;  %805 = vmatprep.subr.mxu1 %v957_v40 }
 0x12a   : > { %799 = vmatmul.mubr.msk.f32.vlgmr.msra.gmra.mxu0 %vm527_vm8, %v518_v39  ;;  %806 = vmatpush3.msra.mxu1 %v603_v43 }
 0x12b   : > { %807 = vmatprep.subr.mxu1 %v957_v40 }
 0x12c   : > { %808 = vmatpush3.msra.mxu1 %v602_v44 }
 0x1ea   : > { %v597_v46 = vpop.f32.mrf.mxu0 }
 0x1eb   : > { %v598_v47 = vadd.f32 %v773_v45, %v597_v46 }
 0x1ec   : > { %v800_v48 = vpop.f32.mrf.mxu0 }
 0x1ed   : > { %v601_v49 = vmax.f32 %v598_v47, 0.0 }
 0x1ef   : > { %810 = vmatmul.mubr.msk.f32.vlgmr.msra.gmra.mxu1 %vm613_vm10, %v601_v49 }
 0x2af   : > { %v683_v51 = vpop.f32.mrf.mxu1 }
 0x2b0   : > { %v684_v52 = vadd.f32 %v775_v50, %v683_v51 }
 0x2b1   : > { %v811_v53 = vpop.f32.mrf.mxu1 }
 0x2b2   : > { %688 = vst.msk [vmem:[#allocation7] sm:$0xf] %vm687_vm11, %v684_v52 }
 0x2b3 PF: > { %p819_p2 = scmp.eq.s32.totalorder %s1014_s25, 2  ;;  %s959_s16 = smov [#allocation7]  }
 0x2b4   : > { %s696_s30 = sshll.u32 %s959_s16, 4  ;;  %s697_s30 = int_to_ptr.vmem [resolvable:$true] %s696_s30 }
 0x2b5   : > { %s887_s19 = scalar_lea.vmem %s697_s30, 64  ;;  %p894_p7 = scmp.lt.s32.totalorder %s697_s30, %s697_s30 }
 0x2b6   : > { %p888_p3 = scmp.ne.s32.totalorder %s697_s30, %s887_s19  ;;  %p895_p8 = scmp.lt.s32.totalorder %s887_s19, %s887_s19 }
 0x2b8   : > { %p889_p4 = pnand %p888_p3, %p819_p2  ;;  %p896_p10 = por %p895_p8, %p894_p7 }
 0x2ba   : > { %p890_p5 = pneg %p889_p4 }
 0x2bc   : > { %p897_p11 = pnand %p896_p10, %p890_p5 }
 0x2be   : > { %900 = shalt.err (!%p897_p11)
}
 0x2bf   : > { %816 = dma.vmem_to_hbm [thread:$0]  (%p819_p2), %s697_s30, 64, %s1143_s6, [#allocation6]  }
 0x2c0   : > { %932 = dma.done.wait (%p819_p2), [#allocation6], 64  }
 0x2c1   : > { %934 = vsyncadd (%p819_p2), [#allocation6], 4294967232 }
 0x2c2 PF: > { %p17_p12 = scmp.ge.s32.totalorder %s1017_s26, 5   ;;  %s1145_s21 = smov %s941_s22 }
 0x2c3   : > { %s1146_s22 = smov %s945_s23  ;;  %s1147_s23 = smov %s1027_s29 }
 0x2c4   : > { %s1148_s24 = smov %s1017_s26  ;;  %19 = sbr.rel (!%p17_p12) target bundleno = 4 (0x4), region = 92 }
 0x2c9   :  { %709 = vsyncpa [#allocation5], 1 }
 0x2ca   :  { %711 = vsyncpa [#allocation5 + $0x1], 1 }
 0x2cb   :  { %712 = vsyncpa [#allocation6], 1 }
 0x2cc   :  { %714 = vsyncpa [#allocation6 + $0x1], 1 }

</bundles_post_ra>
